<compile_context>
chip_gen: v5e
topology: v5e:2x2
jax: 0.10.0
libtpu: 0.0.40
codegen_flags: <defaults>
</compile_context>

<pallas_src>
import functools

import jax
import jax.numpy as jnp
from jax import lax
from jax.experimental import pallas as pl
from jax.experimental.pallas import tpu as pltpu

VMEM_SPEC = pl.BlockSpec(memory_space=pltpu.MemorySpace.VMEM)

LANE = 128


def _round_up(n, m):
    return ((n + m - 1) // m) * m


def _tpu_vmem_capacity_bytes():
    try:
        return int(pltpu.get_tpu_info().vmem_capacity_bytes)
    except Exception:
        return 64 << 20          # conservative fallback (v7x-sized)


_VMEM_CAP = _tpu_vmem_capacity_bytes()
VMEM_LIMIT = (_VMEM_CAP * 3) // 4                 # leave headroom under physical VMEM
ROW_TILE = 512 if _VMEM_CAP >= (100 << 20) else 256   # bigger row tiles on v5e/v6e


def _pad_rows(n):
    n = max(n, 16)
    if n <= ROW_TILE:
        return _round_up(n, 16)                   # bf16 sublane-pack friendly
    return _round_up(n, ROW_TILE)


def _pick_tile(total, candidates):
    for c in candidates:
        if c <= total and total % c == 0:
            return c
    return total


# --------------------------------------------------------------------------- #
# Kernel 1: row+column-tiled Linear (+ optional ReLU).  bf16 in / bf16 out,
# bf16 MXU matmul with f32 accumulation and f32 bias.
# --------------------------------------------------------------------------- #
def _linear_kernel(x_ref, w_ref, b_ref, o_ref, *, activation):
    y = jnp.dot(x_ref[...], w_ref[...], preferred_element_type=jnp.float32) + b_ref[...]
    if activation == "relu":
        y = jnp.maximum(y, 0.0)
    o_ref[...] = y.astype(o_ref.dtype)


def linear_tiled(x, w, b, activation="none", out_dtype=jnp.bfloat16):
    rows, kin = x.shape
    _, nout = w.shape
    tm = rows if rows <= ROW_TILE else ROW_TILE
    tn = nout if nout <= 1024 else _pick_tile(nout, (1024, 512, 256, 128))
    grid = (rows // tm, nout // tn)
    return pl.pallas_call(
        functools.partial(_linear_kernel, activation=activation),
        out_shape=jax.ShapeDtypeStruct((rows, nout), out_dtype),
        grid=grid,
        in_specs=[pl.BlockSpec((tm, kin), lambda i, j: (i, 0)),
                  pl.BlockSpec((kin, tn), lambda i, j: (0, j)),
                  pl.BlockSpec((1, tn), lambda i, j: (0, j))],
        out_specs=pl.BlockSpec((tm, tn), lambda i, j: (i, j)),
        compiler_params=pltpu.CompilerParams(
            dimension_semantics=("parallel", "parallel"),
            vmem_limit_bytes=VMEM_LIMIT),
    )(x, w, b)


# --------------------------------------------------------------------------- #
# Kernel 2: fused IMPContext message passing + classifier heads.
# vert/edge state, weights and (in-kernel-built) adjacency stay resident for
# all iterations; everything heavy runs on the bf16 MXU with f32 accumulation.
# --------------------------------------------------------------------------- #
def _imp_fused_kernel(obj_rep_ref, rel_rep_ref, pcols_ref, prows_ref,
                      nwih_ref, nwhh_ref, nbih_ref, nbhh_ref,
                      ewih_ref, ewhh_ref, ebih_ref, ebhh_ref,
                      wge_ref, wgvs_ref, wgvo_ref, gb_ref,
                      ow_ref, ob_ref, rw_ref, rb_ref,
                      obj_out_ref, rel_out_ref,
                      *, HP, num_iter):
    f32, bf16 = jnp.float32, jnp.bfloat16
    nobj = obj_rep_ref.shape[0]
    nrel = rel_rep_ref.shape[0]

    # --- hoisted once: GRU / gate / classifier weights resident for all iters -----
    nwih, nwhh = nwih_ref[...], nwhh_ref[...]
    ewih, ewhh = ewih_ref[...], ewhh_ref[...]
    # Biases stay (1, 3*HP); implicit sublane broadcast in the adds (no materialize).
    nbih, nbhh = nbih_ref[...], nbhh_ref[...]
    ebih, ebhh = ebih_ref[...], ebhh_ref[...]
    wge, wgvs, wgvo = wge_ref[...], wgvs_ref[...], wgvo_ref[...]
    gb = gb_ref[...]                                   # (1, 128), lanes 0..3 used

    # --- one-hot adjacency built in-kernel from int32 indices (bf16 0/1 is exact) --
    one = jnp.ones((), bf16)
    zero = jnp.zeros((), bf16)
    pcols = pcols_ref[...]                             # (nrel, 2): [sub, obj], pad=-1
    prows = prows_ref[...]                             # (2, nrel)
    lane_iota = lax.broadcasted_iota(jnp.int32, (nrel, nobj), 1)
    subT = jnp.where(lane_iota == pcols[:, 0:1], one, zero)   # (nrel, nobj) gather
    objT = jnp.where(lane_iota == pcols[:, 1:2], one, zero)
    sub_iota = lax.broadcasted_iota(jnp.int32, (nobj, nrel), 0)
    sub2rel = jnp.where(sub_iota == prows[0:1, :], one, zero)  # (nobj, nrel) scatter
    obj2rel = jnp.where(sub_iota == prows[1:2, :], one, zero)

    # --- PyTorch nn.GRUCell semantics, gate order (r, z, n); gates 128-aligned -----
    def gru(x, h, wih, whh, bih, bhh):
        gi = jnp.dot(x.astype(bf16), wih, preferred_element_type=f32) + bih
        gh = jnp.dot(h.astype(bf16), whh, preferred_element_type=f32) + bhh
        r = jax.nn.sigmoid(gi[:, 0:HP] + gh[:, 0:HP])
        z = jax.nn.sigmoid(gi[:, HP:2 * HP] + gh[:, HP:2 * HP])
        n = jnp.tanh(gi[:, 2 * HP:3 * HP] + r * gh[:, 2 * HP:3 * HP])
        return (1.0 - z) * n + z * h

    def gru_from_zero(x, wih, bih, bhh):               # h == 0: skip the h matmul
        gi = jnp.dot(x.astype(bf16), wih, preferred_element_type=f32) + bih
        r = jax.nn.sigmoid(gi[:, 0:HP] + bhh[:, 0:HP])
        z = jax.nn.sigmoid(gi[:, HP:2 * HP] + bhh[:, HP:2 * HP])
        n = jnp.tanh(gi[:, 2 * HP:3 * HP] + r * bhh[:, 2 * HP:3 * HP])
        return (1.0 - z) * n

    # --- initial GRU step from zero hidden state -----------------------------------
    vert0 = gru_from_zero(obj_rep_ref[...], nwih, nbih, nbhh)
    edge0 = gru_from_zero(rel_rep_ref[...], ewih, ebih, ebhh)

    # --- iterative message passing, state carried in VMEM/vregs --------------------
    def body(_, carry):
        vert, edge = carry
        vert_bf = vert.astype(bf16)
        edge_bf = edge.astype(bf16)

        # gathers vert[sub] / vert[obj] as bf16 one-hot matmuls on the MXU
        sub_vert = jnp.dot(subT, vert_bf, preferred_element_type=f32)   # (nrel, HP)
        obj_vert = jnp.dot(objT, vert_bf, preferred_element_type=f32)
        sub_bf = sub_vert.astype(bf16)
        obj_bf = obj_vert.astype(bf16)

        # all 4 gates in one MXU block: lanes 0..3 = (sub, obj, out, in)
        gpre = (jnp.dot(edge_bf, wge, preferred_element_type=f32)
                + jnp.dot(sub_bf, wgvs, preferred_element_type=f32)
                + jnp.dot(obj_bf, wgvo, preferred_element_type=f32)) + gb
        gates = jax.nn.sigmoid(gpre[:, 0:4])
        g_sub, g_obj = gates[:, 0:1], gates[:, 1:2]
        g_out, g_in = gates[:, 2:3], gates[:, 3:4]

        edge_new = gru(g_sub * sub_vert + g_obj * obj_vert, edge,
                       ewih, ewhh, ebih, ebhh)

        # scatter-add of weighted edges back to vertices, bf16 one-hot matmuls
        w_out = (g_out * edge).astype(bf16)
        w_in = (g_in * edge).astype(bf16)
        vert_ctx = (jnp.dot(sub2rel, w_out, preferred_element_type=f32)
                    + jnp.dot(obj2rel, w_in, preferred_element_type=f32))
        vert_new = gru(vert_ctx, vert, nwih, nwhh, nbih, nbhh)
        return vert_new, edge_new

    vert, edge = lax.fori_loop(0, num_iter, body, (vert0, edge0), unroll=True)

    # --- classifier heads (lane-dense, 128-padded widths) ---------------------------
    obj_out_ref[...] = jnp.dot(vert.astype(bf16), ow_ref[...],
                               preferred_element_type=f32) + ob_ref[...]
    rel_out_ref[...] = jnp.dot(edge.astype(bf16), rw_ref[...],
                               preferred_element_type=f32) + rb_ref[...]


# --------------------------------------------------------------------------- #
# Parameter init (logical, unpadded; deterministic xavier-like)
# --------------------------------------------------------------------------- #
def _xavier(key, shape):
    fan_in, fan_out = shape
    std = (2.0 / (fan_in + fan_out)) ** 0.5
    return (std * jax.random.normal(key, shape)).astype(jnp.float32)


def init_params(key, cfg):
    H, P, M = cfg["hidden_dim"], cfg["pooling_dim"], cfg["mlp_head_dim"]
    ks = iter(jax.random.split(key, 32))
    gru = lambda: {
        "wih": _xavier(next(ks), (H, 3 * H)),
        "whh": _xavier(next(ks), (H, 3 * H)),
        "bih": jnp.zeros((1, 3 * H), jnp.float32),
        "bhh": jnp.zeros((1, 3 * H), jnp.float32),
    }
    gate = lambda: {"w": _xavier(next(ks), (1, 2 * H)), "b": jnp.zeros((1, 1), jnp.float32)}
    return {
        "up_dim": {"w": _xavier(next(ks), (M, P)), "b": jnp.zeros((1, P), jnp.float32)},
        "obj_unary": {"w": _xavier(next(ks), (P, H)), "b": jnp.zeros((1, H), jnp.float32)},
        "edge_unary": {"w": _xavier(next(ks), (P, H)), "b": jnp.zeros((1, H), jnp.float32)},
        "node_gru": gru(),
        "edge_gru": gru(),
        "sub_vert_w": gate(),
        "obj_vert_w": gate(),
        "out_edge_w": gate(),
        "in_edge_w": gate(),
        "obj_fc": {"w": _xavier(next(ks), (H, cfg["num_obj_cls"])),
                   "b": jnp.zeros((1, cfg["num_obj_cls"]), jnp.float32)},
        "rel_fc": {"w": _xavier(next(ks), (H, cfg["num_rel_cls"])),
                   "b": jnp.zeros((1, cfg["num_rel_cls"]), jnp.float32)},
    }


# --------------------------------------------------------------------------- #
# One-time padding / bf16 packing of parameters to TPU-friendly layouts
# --------------------------------------------------------------------------- #
def pad_params(params, cfg):
    H, P, M = cfg["hidden_dim"], cfg["pooling_dim"], cfg["mlp_head_dim"]
    HP, PP, MP = _round_up(H, LANE), _round_up(P, LANE), _round_up(M, LANE)
    CPO = _round_up(cfg["num_obj_cls"], LANE)
    CPR = _round_up(cfg["num_rel_cls"], LANE)

    def pad_linear(p, in_d, in_p, out_d, out_p):
        w = jnp.pad(p["w"], ((0, in_p - in_d), (0, out_p - out_d))).astype(jnp.bfloat16)
        b = jnp.pad(p["b"], ((0, 0), (0, out_p - out_d))).astype(jnp.float32)
        return {"w": w, "b": b}

    def pad_gate_cols(m):   # (R, 3H) -> (R, 3HP), each gate at a 128-aligned block
        parts = [jnp.pad(m[:, g * H:(g + 1) * H], ((0, 0), (0, HP - H))) for g in range(3)]
        return jnp.concatenate(parts, axis=1)

    def pad_gru(p):
        return {
            "wih": jnp.pad(pad_gate_cols(p["wih"]), ((0, HP - H), (0, 0))).astype(jnp.bfloat16),
            "whh": jnp.pad(pad_gate_cols(p["whh"]), ((0, HP - H), (0, 0))).astype(jnp.bfloat16),
            "bih": pad_gate_cols(p["bih"]).astype(jnp.float32),   # stays (1, 3HP)
            "bhh": pad_gate_cols(p["bhh"]).astype(jnp.float32),
        }

    # Gate (1, 2H) weights -> MXU-friendly (HP, 128) stacks, lanes 0..3 = the 4 gates.
    # Concat order in the PyTorch module: sub/obj gates see cat(vert, edge),
    # out/in gates see cat(edge, vert) -> pick the halves accordingly.
    def halves(name, vert_first):
        w = params[name]["w"][0]
        if vert_first:
            wv, we = w[:H], w[H:2 * H]
        else:
            we, wv = w[:H], w[H:2 * H]
        return jnp.pad(wv, (0, HP - H)), jnp.pad(we, (0, HP - H))

    wv_sub, we_sub = halves("sub_vert_w", True)
    wv_obj, we_obj = halves("obj_vert_w", True)
    wv_out, we_out = halves("out_edge_w", False)
    wv_in, we_in = halves("in_edge_w", False)

    wge = jnp.zeros((HP, LANE), jnp.float32)
    wge = wge.at[:, 0].set(we_sub).at[:, 1].set(we_obj).at[:, 2].set(we_out).at[:, 3].set(we_in)
    wgvs = jnp.zeros((HP, LANE), jnp.float32).at[:, 0].set(wv_sub).at[:, 2].set(wv_out)
    wgvo = jnp.zeros((HP, LANE), jnp.float32).at[:, 1].set(wv_obj).at[:, 3].set(wv_in)
    gb = jnp.zeros((1, LANE), jnp.float32)
    for lane, name in enumerate(["sub_vert_w", "obj_vert_w", "out_edge_w", "in_edge_w"]):
        gb = gb.at[0, lane].set(params[name]["b"][0, 0])

    return {
        "dims": dict(HP=HP, PP=PP, MP=MP, CPO=CPO, CPR=CPR),
        "up_dim": pad_linear(params["up_dim"], M, MP, P, PP),
        "obj_unary": pad_linear(params["obj_unary"], P, PP, H, HP),
        "edge_unary": pad_linear(params["edge_unary"], P, PP, H, HP),
        "node_gru": pad_gru(params["node_gru"]),
        "edge_gru": pad_gru(params["edge_gru"]),
        "gate_we": wge.astype(jnp.bfloat16),
        "gate_wv_sub": wgvs.astype(jnp.bfloat16),
        "gate_wv_obj": wgvo.astype(jnp.bfloat16),
        "gate_b": gb,
        "obj_fc": pad_linear(params["obj_fc"], H, HP, cfg["num_obj_cls"], CPO),
        "rel_fc": pad_linear(params["rel_fc"], H, HP, cfg["num_rel_cls"], CPR),
    }


# --------------------------------------------------------------------------- #
# IMPPredictor forward
# --------------------------------------------------------------------------- #
def imp_predictor_forward(pp, cfg, roi_features, union_features, num_objs, rel_pair_idxs):
    num_rels = [int(r.shape[0]) for r in rel_pair_idxs]
    assert len(num_rels) == len(num_objs)

    d = pp["dims"]
    HP, PP, MP = d["HP"], d["PP"], d["MP"]
    P, M = cfg["pooling_dim"], cfg["mlp_head_dim"]

    obj_count = int(roi_features.shape[0])
    rel_count = sum(num_rels)
    NOBJ_P = _pad_rows(obj_count)
    NREL_P = _pad_rows(rel_count)

    # --- pad inputs to aligned shapes and cast to bf16 (kernels consume bf16) ------
    roi_p = jnp.pad(roi_features.astype(jnp.float32),
                    ((0, NOBJ_P - obj_count), (0, PP - P))).astype(jnp.bfloat16)

    # --- IMPPredictor: optional union-feature up-projection -------------------------
    if cfg["pooling_dim"] != cfg["mlp_head_dim"]:        # union_single_not_match
        uni_p = jnp.pad(union_features.astype(jnp.float32),
                        ((0, NREL_P - rel_count), (0, MP - M))).astype(jnp.bfloat16)
        uni_p = linear_tiled(uni_p, pp["up_dim"]["w"], pp["up_dim"]["b"])
    else:
        uni_p = jnp.pad(union_features.astype(jnp.float32),
                        ((0, NREL_P - rel_count), (0, PP - P))).astype(jnp.bfloat16)

    # --- IMPContext unary projections (tiled Linear kernels, bf16 out) --------------
    obj_rep = linear_tiled(roi_p, pp["obj_unary"]["w"], pp["obj_unary"]["b"])
    rel_rep = linear_tiled(uni_p, pp["edge_unary"]["w"], pp["edge_unary"]["b"],
                           activation="relu")

    # --- global sub/obj index vectors (padded rels -> -1, match no object) ----------
    sub_parts, obj_parts = [], []
    off = 0
    for pair_idx, no in zip(rel_pair_idxs, num_objs):
        sub_parts.append(pair_idx[:, 0].astype(jnp.int32) + off)
        obj_parts.append(pair_idx[:, 1].astype(jnp.int32) + off)
        off += no
    sub_g = jnp.concatenate(sub_parts, axis=0)
    obj_g = jnp.concatenate(obj_parts, axis=0)
    pad_r = NREL_P - rel_count
    sub_gp = jnp.pad(sub_g, (0, pad_r), constant_values=-1)
    obj_gp = jnp.pad(obj_g, (0, pad_r), constant_values=-1)
    pair_cols = jnp.stack([sub_gp, obj_gp], axis=1)      # (NREL_P, 2): rel-major
    pair_rows = jnp.stack([sub_gp, obj_gp], axis=0)      # (2, NREL_P): obj-major

    # --- fused message passing + classifiers (single pallas_call) -------------------
    ng, eg = pp["node_gru"], pp["edge_gru"]
    obj_dists_p, rel_dists_p = pl.pallas_call(
        functools.partial(_imp_fused_kernel, HP=HP, num_iter=cfg["num_iter"]),
        out_shape=(jax.ShapeDtypeStruct((NOBJ_P, d["CPO"]), jnp.float32),
                   jax.ShapeDtypeStruct((NREL_P, d["CPR"]), jnp.float32)),
        in_specs=[VMEM_SPEC] * 20,
        out_specs=(VMEM_SPEC, VMEM_SPEC),
        compiler_params=pltpu.CompilerParams(vmem_limit_bytes=VMEM_LIMIT),
    )(obj_rep, rel_rep, pair_cols, pair_rows,
      ng["wih"], ng["whh"], ng["bih"], ng["bhh"],
      eg["wih"], eg["whh"], eg["bih"], eg["bhh"],
      pp["gate_we"], pp["gate_wv_sub"], pp["gate_wv_obj"], pp["gate_b"],
      pp["obj_fc"]["w"], pp["obj_fc"]["b"], pp["rel_fc"]["w"], pp["rel_fc"]["b"])

    # TODO(synk): 'predcls' mode (one-hot GT object labels) not implemented; using
    #             the obj_fc classification path (sgcls / sgdet).
    obj_dists = obj_dists_p[:obj_count, :cfg["num_obj_cls"]]
    rel_dists = rel_dists_p[:rel_count, :cfg["num_rel_cls"]]

    # --- IMPPredictor: split per image (use_bias is hard-coded False upstream) ------
    obj_splits, rel_splits = [], []
    o = 0
    for n in num_objs:
        obj_splits.append(obj_dists[o:o + n])
        o += n
    r = 0
    for n in num_rels:
        rel_splits.append(rel_dists[r:r + n])
        r += n
    add_losses = {}
    return obj_splits, rel_splits, add_losses


# --------------------------------------------------------------------------- #
# Demo
# --------------------------------------------------------------------------- #
if __name__ == "__main__":
    cfg = dict(
        hidden_dim=32,      # MODEL.ROI_RELATION_HEAD.CONTEXT_HIDDEN_DIM
        pooling_dim=64,     # MODEL.ROI_RELATION_HEAD.CONTEXT_POOLING_DIM
        mlp_head_dim=48,    # MODEL.ROI_BOX_HEAD.MLP_HEAD_DIM (!= pooling_dim -> up_dim path)
        num_obj_cls=16,     # MODEL.ROI_BOX_HEAD.NUM_CLASSES
        num_rel_cls=12,     # MODEL.ROI_RELATION_HEAD.NUM_CLASSES
        num_iter=3,
    )

    root = jax.random.PRNGKey(0)
    k_param, k_roi, k_uni, k_p0, k_p1 = jax.random.split(root, 5)

    params = init_params(k_param, cfg)
    padded_params = pad_params(params, cfg)

    num_objs = [5, 3]                               # objects per image ("proposals")
    roi_features = jax.random.normal(k_roi, (sum(num_objs), cfg["pooling_dim"]), jnp.float32)

    rel_pair_idxs = [
        jax.random.randint(k_p0, (6, 2), 0, num_objs[0], dtype=jnp.int32),
        jax.random.randint(k_p1, (4, 2), 0, num_objs[1], dtype=jnp.int32),
    ]
    num_rels_total = sum(int(r.shape[0]) for r in rel_pair_idxs)
    union_features = jax.random.normal(k_uni, (num_rels_total, cfg["mlp_head_dim"]), jnp.float32)

    obj_dists, rel_dists, add_losses = imp_predictor_forward(
        padded_params, cfg, roi_features, union_features, num_objs, rel_pair_idxs)

    jax.block_until_ready(obj_dists + rel_dists)
    assert [d.shape for d in obj_dists] == [(5, cfg["num_obj_cls"]), (3, cfg["num_obj_cls"])]
    assert [d.shape for d in rel_dists] == [(6, cfg["num_rel_cls"]), (4, cfg["num_rel_cls"])]
    assert all(bool(jnp.isfinite(d).all()) for d in obj_dists + rel_dists)
    print("KERNEL_OK")
</pallas_src>

<mosaic_0001>
module attributes {stable_mosaic.version = 11 : i64} {
  func.func @_linear_kernel(%arg0: i32, %arg1: i32, %arg2: memref<16x128xbf16, #tpu.memory_space<vmem>>, %arg3: memref<128x128xbf16, #tpu.memory_space<vmem>>, %arg4: memref<1x128xf32, #tpu.memory_space<vmem>>, %arg5: memref<16x128xbf16, #tpu.memory_space<vmem>>) attributes {dimension_semantics = [#tpu.dimension_semantics<parallel>, #tpu.dimension_semantics<parallel>], iteration_bounds = array<i64: 1, 1>, scalar_prefetch = 0 : i64, scratch_operands = 0 : i64, tpu.core_type = #tpu.core_type<tc>, window_params = [{transform_indices = @transform_0, window_bounds = array<i64: 16, 128>}, {transform_indices = @transform_1, window_bounds = array<i64: 128, 128>}, {transform_indices = @transform_2, window_bounds = array<i64: 1, 128>}, {transform_indices = @transform_3, window_bounds = array<i64: 16, 128>}]} {
    %c0 = arith.constant 0 : index
    %c0_0 = arith.constant 0 : index
    %0 = vector.load %arg2[%c0, %c0_0] : memref<16x128xbf16, #tpu.memory_space<vmem>>, vector<16x128xbf16>
    %c0_1 = arith.constant 0 : index
    %c0_2 = arith.constant 0 : index
    %1 = vector.load %arg3[%c0_1, %c0_2] : memref<128x128xbf16, #tpu.memory_space<vmem>>, vector<128x128xbf16>
    %cst = arith.constant dense<0.000000e+00> : vector<16x128xf32>
    %2 = tpu.matmul %0, %1, %cst {dimension_numbers = #tpu.dot_dimension_numbers<[1], [0], [0], [1], [0, 0, 1, 1], [], []>} : vector<16x128xbf16>, vector<128x128xbf16>, vector<16x128xf32> -> vector<16x128xf32>
    %c0_3 = arith.constant 0 : index
    %c0_4 = arith.constant 0 : index
    %3 = vector.load %arg4[%c0_3, %c0_4] : memref<1x128xf32, #tpu.memory_space<vmem>>, vector<1x128xf32>
    %4 = vector.broadcast %3 : vector<1x128xf32> to vector<16x128xf32>
    %5 = arith.addf %2, %4 : vector<16x128xf32>
    %6 = arith.truncf %5 : vector<16x128xf32> to vector<16x128xbf16>
    %c0_5 = arith.constant 0 : index
    %c0_6 = arith.constant 0 : index
    %7 = vector.load %arg5[%c0_5, %c0_6] : memref<16x128xbf16, #tpu.memory_space<vmem>>, vector<16x128xbf16>
    tpu.vector_store %arg5[%c0_5, %c0_6], %6 {strides = array<i32>} : memref<16x128xbf16, #tpu.memory_space<vmem>>, vector<16x128xbf16>,
    return
  }
  func.func @transform_0(%arg0: i32, %arg1: i32) -> (i32, i32) {
    %c0_i32 = arith.constant 0 : i32
    %c0_i32_0 = arith.constant 0 : i32
    return %arg0, %c0_i32 : i32, i32
  }
  func.func @transform_1(%arg0: i32, %arg1: i32) -> (i32, i32) {
    %c0_i32 = arith.constant 0 : i32
    %c0_i32_0 = arith.constant 0 : i32
    return %c0_i32, %arg1 : i32, i32
  }
  func.func @transform_2(%arg0: i32, %arg1: i32) -> (i32, i32) {
    %c0_i32 = arith.constant 0 : i32
    %c0_i32_0 = arith.constant 0 : i32
    return %c0_i32, %arg1 : i32, i32
  }
  func.func @transform_3(%arg0: i32, %arg1: i32) -> (i32, i32) {
    %c0_i32 = arith.constant 0 : i32
    return %arg0, %arg1 : i32, i32
  }
}

</mosaic_0001>

<bundles_post_ra>
// kernel: tpu_custom_call.1
= control target key start
LH: loop header
LB: loop body
LE: loop exit
PB: predicated region body
PF: predicated region fallthrough
CT: control target
= control target key end

     0   :  { %8 = vsyncpa [#allocation3], 0  ;;  %s341_s0 = inlined_call_operand.hbm [shape: bf16[16,128], index: 0, kind: input, shape index: {}]   ;;  %s342_s1 = inlined_call_operand.hbm [shape: bf16[128,128], index: 1, kind: input, shape index: {}]   ;;  %s343_s2 = inlined_call_operand.vmem [shape: f32[1,128], index: 2, kind: input, shape index: {}]   ;;  %s344_s3 = inlined_call_operand.hbm [shape: bf16[16,128], index: 3, kind: output, shape index: {}]  }
   0x1   :  { %9 = vsyncpa [#allocation6], 0 }
   0x2   :  { %10 = vsyncpa [#allocation4], 0  ;;  %s15_s14 = sshll.u32 %s341_s0, 4  ;;  %s295_s15 = smov [#allocation2]   ;;  %s16_s14 = int_to_ptr.hbm [resolvable:$true] %s15_s14 }
   0x3   :  { %s17_s16 = sshll.u32 %s295_s15, 4  ;;  %s28_s19 = sshll.u32 %s342_s1, 4  ;;  %s18_s16 = int_to_ptr.vmem [resolvable:$true] %s17_s16  ;;  %s29_s19 = int_to_ptr.hbm [resolvable:$true] %s28_s19 }
   0x4   :  { %s296_s20 = smov 64   ;;  %s297_s21 = smov 4  }
   0x5   :  { %23 = dma.hbm_to_vmem [thread:$0]  %s16_s14, 128, %s18_s16, [#allocation3], %s296_s20, %s296_s20, %s297_s21  }
   0x6   :  { %s298_s22 = smov [#allocation5]  }
   0x7   :  { %s30_s23 = sshll.u32 %s298_s22, 4  ;;  %s31_s23 = int_to_ptr.vmem [resolvable:$true] %s30_s23 }
   0x8   :  { %36 = dma.hbm_to_vmem [thread:$0]  %s29_s19, 1024, %s31_s23, [#allocation6], %s296_s20, %s296_s20, %s297_s21  }
   0x9   :  { %289 = dma.done.wait [#allocation3], 128  }
   0xa   :  { %290 = vsyncadd [#allocation3], 4294967168 }
   0xb   :  { %291 = dma.done.wait [#allocation6], 1024  }
   0xc   :  { %292 = vsyncadd [#allocation6], 4294966272  ;;  %v205_v0 = vld [vmem:[#allocation5 + $0x38] sm:$0xff]  ;;  %v204_v1 = vld [vmem:[#allocation5 + $0x30] sm:$0xff]  ;;  %s299_s24 = smov [#allocation7]   ;;  %s147_s28 = sshll.u32 %s344_s3, 4  ;;  %s148_s28 = int_to_ptr.hbm [resolvable:$true] %s147_s28 }
   0xd   :  { %123 = vmatpush.bf16.msra.mxu0 %v205_v0  ;;  %v203_v2 = vld [vmem:[#allocation5 + $0x28] sm:$0xff]  ;;  %v202_v3 = vld [vmem:[#allocation5 + $0x20] sm:$0xff]  ;;  %v201_v4 = vld [vmem:[#allocation5 + $0x18] sm:$0xff]  ;;  %s145_s25 = sshll.u32 %s299_s24, 4  ;;  %s146_s25 = int_to_ptr.vmem [resolvable:$true] %s145_s25 }
   0xe   :  { %v200_v5 = vld [vmem:[#allocation5 + $0x10] sm:$0xff]  ;;  %v199_v6 = vld [vmem:[#allocation5 + $0x8] sm:$0xff]  ;;  %v198_v7 = vld [vmem:[#allocation5] sm:$0xff] }
   0xf   :  { %v197_v8 = vld [vmem:[#allocation2] sm:$0xff] }
  0x10   :  { %v216_v10 = vld [vmem:[%s343_s2] ss:$0 sm:$0xff] }
  0x11   :  { %124 = vmatpush.bf16.msra.mxu0 %v204_v1 }
  0x15   :  { %125 = vmatpush.bf16.msra.mxu0 %v203_v2 }
  0x19   :  { %126 = vmatpush.bf16.msra.mxu0 %v202_v3 }
  0x1d   :  { %127 = vmatpush.bf16.msra.mxu0 %v201_v4 }
  0x21   :  { %128 = vmatpush.bf16.msra.mxu0 %v200_v5 }
  0x25   :  { %129 = vmatpush.bf16.msra.mxu0 %v199_v6 }
  0x29   :  { %130 = vmatpush.bf16.msra.mxu0 %v198_v7 }
  0x2c   :  { %131 = vmatmul.bf16.vlgmr.msra.gmra.mxu0 %v197_v8 }
  0xa9   :  { %v132_v9 = vpop.f32.mrf.mxu0 }
  0xaa   :  { %v133_v12 = vadd.f32 %v216_v10, %v132_v9 }
  0xb1   :  { %v134_v11 = vpop.f32.mrf.mxu0 }
  0xb2   :  { %v135_v13 = vadd.f32 %v216_v10, %v134_v11 }
  0xb4   :  { %v209_v14 = vpack.c.bf16 %v135_v13, %v133_v12 }
  0xb6   :  { %210 = vst [vmem:[#allocation7] sm:$0xff] %v209_v14  }
  0xb7   :  { %153 = dma.vmem_to_hbm [thread:$0]  %s146_s25, 128, %s148_s28, [#allocation4], %s296_s20, %s296_s20, %s297_s21  }
  0xb8   :  { %293 = dma.done.wait [#allocation4], 128  }
  0xb9   :  { %294 = vsyncadd [#allocation4], 4294967168 }
  0xba   :  { %158 = vsyncpa [#allocation3], 1 }
  0xbb   :  { %159 = vsyncpa [#allocation6], 1 }
  0xbc   :  { %160 = vsyncpa [#allocation4], 1 }

</bundles_post_ra>
